<compile_context>
chip_gen: v6e
topology: v6e:2x2x1
jax: 0.10.0
libtpu: 0.0.40
codegen_flags: <defaults>
</compile_context>

<pallas_src>
import jax
import jax.numpy as jnp
import numpy as np
from jax.experimental import pallas as pl
from jax.experimental.pallas import tpu as pltpu


# ----------------------------------------------------------------------------
# Host-side helpers.
# ----------------------------------------------------------------------------
def _interp_matrix(n_in: int, n_out: int) -> np.ndarray:
    """1-D bilinear interpolation matrix M (n_out, n_in), align_corners=True."""
    m = np.zeros((n_out, n_in), np.float32)
    if n_out == 1:
        src = np.zeros((1,), np.float64)
    else:
        src = np.arange(n_out, dtype=np.float64) * (n_in - 1) / (n_out - 1)
    i0 = np.clip(np.floor(src).astype(np.int64), 0, n_in - 1)
    i1 = np.minimum(i0 + 1, n_in - 1)
    f = (src - i0).astype(np.float32)
    rows = np.arange(n_out)
    m[rows, i0] += 1.0 - f
    m[rows, i1] += f                     # i0 == i1 at the borders: weights sum to 1
    return m


def _pick_plane_tile(N, H, W, Ho, Wo, itemsize):
    """Planes per grid step.  Returns None if the fused 2-D path is not clean."""
    MAX_BLOCK_BYTES = 4 << 20            # keep well under the scoped-VMEM default
    MXU_DIM = 256
    candidates = []
    for nt in range(1, N + 1):
        if N % nt:
            continue
        # Keep the (8,128) BlockSpec rule satisfied without relayout copies:
        # either the block covers the whole row axis, or its row dim is 8-aligned.
        if nt != N and (nt * H) % 8 != 0:
            continue
        blk = (2 * nt * (H * W + Ho * Wo) * max(itemsize, 4)   # in/out, dbl-buffered
               + (nt * Ho) * (nt * H) * 4                      # block-diag Rh
               + W * Wo * 4                                    # Rw^T
               + nt * Ho * W * 4)                              # intermediate
        if blk > MAX_BLOCK_BYTES:
            continue
        candidates.append(nt)
    if not candidates:
        return None
    # Prefer the largest tile whose block-diag contraction fits one MXU K pass.
    small_k = [nt for nt in candidates if nt * H <= MXU_DIM]
    return max(small_k) if small_k else min(candidates)


# ----------------------------------------------------------------------------
# Pallas kernels.
# ----------------------------------------------------------------------------
def _up_block_kernel(x_ref, rhb_ref, rwt_ref, o_ref):
    # x_ref  : (Nt*H, W)      Nt planes stacked along rows (W on lanes)
    # rhb_ref: (Nt*Ho, Nt*H)  block-diagonal row-interpolation matrix
    # rwt_ref: (W, Wo)        column-interpolation matrix, transposed
    # o_ref  : (Nt*Ho, Wo)    Nt output planes stacked along rows
    x = x_ref[...].astype(jnp.float32)
    t = jnp.dot(rhb_ref[...], x, preferred_element_type=jnp.float32)    # rows
    z = jnp.dot(t, rwt_ref[...], preferred_element_type=jnp.float32)    # cols
    o_ref[...] = z.astype(o_ref.dtype)


def _up_plane_kernel(x_ref, rh_ref, rwt_ref, o_ref):
    # Fallback: one (b, c) plane per step; full (H, W) blocks are always legal.
    x = x_ref[...].astype(jnp.float32)
    t = jnp.dot(rh_ref[...], x, preferred_element_type=jnp.float32)
    o_ref[...] = jnp.dot(t, rwt_ref[...],
                         preferred_element_type=jnp.float32).astype(o_ref.dtype)


# ----------------------------------------------------------------------------
# Wrapper: NCHW in -> NCHW out (same dtype), bilinear x scale_factor,
# align_corners=True (nn.UpsamplingBilinear2d semantics).
# ----------------------------------------------------------------------------
def up_bilinear(x_nchw, scale_factor: int = 2):
    B, C, H, W = x_nchw.shape
    s = int(scale_factor)
    Ho, Wo = H * s, W * s

    rh_np = _interp_matrix(H, Ho)                       # (Ho, H)
    rwt = jnp.asarray(_interp_matrix(W, Wo).T)          # (W, Wo)

    N = B * C
    nt = _pick_plane_tile(N, H, W, Ho, Wo, jnp.dtype(x_nchw.dtype).itemsize)

    if nt is None:
        # Rare fallback (e.g. H not 8-aligned and too big to take whole): one
        # plane per grid step, full-extent (H, W)/(Ho, Wo) blocks.
        return pl.pallas_call(
            _up_plane_kernel,
            out_shape=jax.ShapeDtypeStruct((B, C, Ho, Wo), x_nchw.dtype),
            grid=(B, C),
            in_specs=[
                pl.BlockSpec((None, None, H, W), lambda b, c: (b, c, 0, 0)),
                pl.BlockSpec((Ho, H), lambda b, c: (0, 0)),
                pl.BlockSpec((W, Wo), lambda b, c: (0, 0)),
            ],
            out_specs=pl.BlockSpec((None, None, Ho, Wo),
                                   lambda b, c: (b, c, 0, 0)),
            compiler_params=pltpu.CompilerParams(
                dimension_semantics=("parallel", "parallel")),
        )(x_nchw, jnp.asarray(rh_np), rwt)

    # Fused 2-D path: stack all planes along rows (free, contiguous reshape).
    rhb = jnp.asarray(np.kron(np.eye(nt, dtype=np.float32), rh_np))  # (nt*Ho, nt*H)
    x2 = x_nchw.reshape(N * H, W)

    out2 = pl.pallas_call(
        _up_block_kernel,
        out_shape=jax.ShapeDtypeStruct((N * Ho, Wo), x_nchw.dtype),
        grid=(N // nt,),
        in_specs=[
            pl.BlockSpec((nt * H, W), lambda i: (i, 0)),
            pl.BlockSpec((nt * Ho, nt * H), lambda i: (0, 0)),
            pl.BlockSpec((W, Wo), lambda i: (0, 0)),
        ],
        out_specs=pl.BlockSpec((nt * Ho, Wo), lambda i: (i, 0)),
        compiler_params=pltpu.CompilerParams(
            dimension_semantics=("parallel",)),
    )(x2, rhb, rwt)

    return out2.reshape(B, C, Ho, Wo)


# ----------------------------------------------------------------------------
# Pure-JAX reference (gather formulation, independent of the matmul kernel).
# ----------------------------------------------------------------------------
def _upsample_bilinear_ref(x, scale: int):
    B, C, H, W = x.shape
    Ho, Wo = H * scale, W * scale

    def coords(n_in, n_out):
        if n_out == 1:
            src = jnp.zeros((1,), jnp.float32)
        else:
            src = jnp.arange(n_out, dtype=jnp.float32) * (n_in - 1) / (n_out - 1)
        i0 = jnp.clip(jnp.floor(src).astype(jnp.int32), 0, n_in - 1)
        i1 = jnp.minimum(i0 + 1, n_in - 1)
        f = src - i0.astype(jnp.float32)
        return i0, i1, f

    r0, r1, fr = coords(H, Ho)
    c0, c1, fc = coords(W, Wo)
    xf = x.astype(jnp.float32)
    x00 = xf[:, :, r0][:, :, :, c0]
    x01 = xf[:, :, r0][:, :, :, c1]
    x10 = xf[:, :, r1][:, :, :, c0]
    x11 = xf[:, :, r1][:, :, :, c1]
    fr_ = fr[None, None, :, None]
    fc_ = fc[None, None, None, :]
    top = x00 * (1.0 - fc_) + x01 * fc_
    bot = x10 * (1.0 - fc_) + x11 * fc_
    return top * (1.0 - fr_) + bot * fr_


if __name__ == "__main__":
    key = jax.random.PRNGKey(0)
    B, C, H, W = 2, 4, 16, 16
    scale = 2

    # f32 check
    x = jax.random.normal(key, (B, C, H, W), jnp.float32)
    out = jax.block_until_ready(up_bilinear(x, scale_factor=scale))
    ref = _upsample_bilinear_ref(x, scale)
    np.testing.assert_allclose(np.asarray(out), np.asarray(ref),
                               rtol=1e-4, atol=1e-4)

    # bf16 I/O check (same kernel, f32 accumulation inside)
    xb = x.astype(jnp.bfloat16)
    outb = jax.block_until_ready(up_bilinear(xb, scale_factor=scale))
    refb = _upsample_bilinear_ref(xb.astype(jnp.float32), scale)
    np.testing.assert_allclose(np.asarray(outb).astype(np.float32),
                               np.asarray(refb), rtol=5e-2, atol=5e-2)

    print("KERNEL_OK")
</pallas_src>

<mosaic_0001>
module attributes {stable_mosaic.version = 11 : i64} {
  func.func @_up_block_kernel(%arg0: i32, %arg1: memref<128x16xf32, #tpu.memory_space<vmem>>, %arg2: memref<256x128xf32, #tpu.memory_space<vmem>>, %arg3: memref<16x32xf32, #tpu.memory_space<vmem>>, %arg4: memref<256x32xf32, #tpu.memory_space<vmem>>) attributes {dimension_semantics = [#tpu.dimension_semantics<parallel>], iteration_bounds = array<i64: 1>, scalar_prefetch = 0 : i64, scratch_operands = 0 : i64, tpu.core_type = #tpu.core_type<tc>, window_params = [{transform_indices = @transform_0, window_bounds = array<i64: 128, 16>}, {pipeline_mode = #tpu.pipeline_mode<synchronous>, transform_indices = @transform_1, window_bounds = array<i64: 256, 128>}, {pipeline_mode = #tpu.pipeline_mode<synchronous>, transform_indices = @transform_2, window_bounds = array<i64: 16, 32>}, {transform_indices = @transform_3, window_bounds = array<i64: 256, 32>}]} {
    %c0 = arith.constant 0 : index
    %c0_0 = arith.constant 0 : index
    %0 = vector.load %arg1[%c0, %c0_0] : memref<128x16xf32, #tpu.memory_space<vmem>>, vector<128x16xf32>
    %c0_1 = arith.constant 0 : index
    %c0_2 = arith.constant 0 : index
    %1 = vector.load %arg2[%c0_1, %c0_2] : memref<256x128xf32, #tpu.memory_space<vmem>>, vector<256x128xf32>
    %cst = arith.constant dense<0.000000e+00> : vector<256x16xf32>
    %2 = tpu.matmul %1, %0, %cst {dimension_numbers = #tpu.dot_dimension_numbers<[1], [0], [0], [1], [0, 0, 1, 1], [], []>} : vector<256x128xf32>, vector<128x16xf32>, vector<256x16xf32> -> vector<256x16xf32>
    %c0_3 = arith.constant 0 : index
    %c0_4 = arith.constant 0 : index
    %3 = vector.load %arg3[%c0_3, %c0_4] : memref<16x32xf32, #tpu.memory_space<vmem>>, vector<16x32xf32>
    %cst_5 = arith.constant dense<0.000000e+00> : vector<256x32xf32>
    %4 = tpu.matmul %2, %3, %cst_5 {dimension_numbers = #tpu.dot_dimension_numbers<[1], [0], [0], [1], [0, 0, 1, 1], [], []>} : vector<256x16xf32>, vector<16x32xf32>, vector<256x32xf32> -> vector<256x32xf32>
    %c0_6 = arith.constant 0 : index
    %c0_7 = arith.constant 0 : index
    %5 = vector.load %arg4[%c0_6, %c0_7] : memref<256x32xf32, #tpu.memory_space<vmem>>, vector<256x32xf32>
    tpu.vector_store %arg4[%c0_6, %c0_7], %4 {strides = array<i32>} : memref<256x32xf32, #tpu.memory_space<vmem>>, vector<256x32xf32>,
    return
  }
  func.func @transform_0(%arg0: i32) -> (i32, i32) {
    %c0_i32 = arith.constant 0 : i32
    %c0_i32_0 = arith.constant 0 : i32
    return %arg0, %c0_i32 : i32, i32
  }
  func.func @transform_1(%arg0: i32) -> (i32, i32) {
    %c0_i32 = arith.constant 0 : i32
    %c0_i32_0 = arith.constant 0 : i32
    %c0_i32_1 = arith.constant 0 : i32
    return %c0_i32, %c0_i32_0 : i32, i32
  }
  func.func @transform_2(%arg0: i32) -> (i32, i32) {
    %c0_i32 = arith.constant 0 : i32
    %c0_i32_0 = arith.constant 0 : i32
    %c0_i32_1 = arith.constant 0 : i32
    return %c0_i32, %c0_i32_0 : i32, i32
  }
  func.func @transform_3(%arg0: i32) -> (i32, i32) {
    %c0_i32 = arith.constant 0 : i32
    %c0_i32_0 = arith.constant 0 : i32
    return %arg0, %c0_i32 : i32, i32
  }
}

</mosaic_0001>

<bundles_post_ra>
// kernel: tpu_custom_call.1
= control target key start
LH: loop header
LB: loop body
LE: loop exit
PB: predicated region body
PF: predicated region fallthrough
CT: control target
= control target key end

     0   :  { %8 = vsyncpa [#allocation3], 0  ;;  %s934_s12 = smov [#allocation2]   ;;  %s1174_s0 = inlined_call_operand.vmem [shape: f32[128,16], index: 0, kind: input, shape index: {}]   ;;  %s1175_s1 = inlined_call_operand.hbm [shape: f32[256,128], index: 1, kind: input, shape index: {}]   ;;  %s1176_s2 = inlined_call_operand.vmem [shape: f32[16,32], index: 2, kind: input, shape index: {}]   ;;  %s1177_s3 = inlined_call_operand.vmem [shape: f32[256,32], index: 3, kind: output, shape index: {}]  }
   0x1   :  { %s16_s13 = sshll.u32 %s934_s12, 4  ;;  %s17_s13 = int_to_ptr.vmem [resolvable:$true] %s16_s13 }
   0x2   :  { %s920_s14 = scalar_lea.vmem %s17_s13, 4096  ;;  %p925_p1 = scmp.lt.s32.totalorder %s17_s13, %s17_s13 }
   0x3   :  { %p921_p0 = scmp.ne.s32.totalorder %s17_s13, %s920_s14  ;;  %p926_p2 = scmp.lt.s32.totalorder %s920_s14, %s920_s14 }
   0x5   :  { %p927_p3 = por %p926_p2, %p925_p1 }
   0x7   :  { %p928_p4 = pnand %p927_p3, %p921_p0 }
   0x9   :  { %931 = shalt.err (!%p928_p4)
}
   0xa   :  { %s935_s15 = smov 128   ;;  %s936_s16 = smov 8  }
   0xb   :  { %22 = dma.hbm_to_vmem [thread:$0]  %s1175_s1, 4096, %s17_s13, [#allocation3], %s935_s15, %s935_s15, %s936_s16  }
   0xc   :  { %932 = dma.done.wait [#allocation3], 4096  }
   0xd   :  { %933 = vsyncadd [#allocation3], 4294963200  ;;  %v43_v0 = vld [vmem:[%s1174_s0 + $0x78] sm:$0xff]  ;;  %v42_v1 = vld [vmem:[%s1174_s0 + $0x70] sm:$0xff]  ;;  %vm303_vm0 = vcmask 130048   ;;  %vm625_vm1 = vcmask 261120  }
   0xe   :  { %777 = vmatprep.subr.mxu0 %v43_v0  ;;  %v41_v2 = vld [vmem:[%s1174_s0 + $0x68] sm:$0xff]  ;;  %v40_v3 = vld [vmem:[%s1174_s0 + $0x60] sm:$0xff]  ;;  %v39_v5 = vld [vmem:[%s1174_s0 + $0x58] sm:$0xff] }
   0xf   :  { %778 = vmatpush3.msra.mxu0 %v43_v0  ;;  %v44_v4 = vld [vmem:[#allocation2] sm:$0xff]  ;;  %v38_v6 = vld [vmem:[%s1174_s0 + $0x50] sm:$0xff]  ;;  %v37_v7 = vld [vmem:[%s1174_s0 + $0x48] sm:$0xff] }
  0x10   :  { %779 = vmatprep.subr.mxu0 %v42_v1  ;;  %809 = vmatprep.mubr.f32.mxu0 %v44_v4  ;;  %v36_v8 = vld [vmem:[%s1174_s0 + $0x40] sm:$0xff]  ;;  %v35_v9 = vld [vmem:[%s1174_s0 + $0x38] sm:$0xff]  ;;  %v34_v10 = vld [vmem:[%s1174_s0 + $0x30] sm:$0xff] }
  0x11   :  { %780 = vmatpush3.msra.mxu0 %v42_v1  ;;  %v33_v11 = vld [vmem:[%s1174_s0 + $0x28] sm:$0xff]  ;;  %v32_v12 = vld [vmem:[%s1174_s0 + $0x20] sm:$0xff]  ;;  %v31_v13 = vld [vmem:[%s1174_s0 + $0x18] sm:$0xff] }
  0x12   :  { %781 = vmatprep.subr.mxu0 %v41_v2  ;;  %v30_v14 = vld [vmem:[%s1174_s0 + $0x10] sm:$0xff]  ;;  %v29_v15 = vld [vmem:[%s1174_s0 + $0x8] sm:$0xff]  ;;  %v28_v16 = vld [vmem:[%s1174_s0] sm:$0xff] }
  0x13   :  { %782 = vmatpush3.msra.mxu0 %v41_v2  ;;  %v45_v17 = vld [vmem:[#allocation2 + $0x8] sm:$0xff]  ;;  %v46_v18 = vld [vmem:[#allocation2 + $0x10] sm:$0xff]  ;;  %v47_v19 = vld [vmem:[#allocation2 + $0x18] sm:$0xff] }
  0x14   :  { %783 = vmatprep.subr.mxu0 %v40_v3  ;;  %v48_v20 = vld [vmem:[#allocation2 + $0x20] sm:$0xff]  ;;  %v49_v21 = vld [vmem:[#allocation2 + $0x28] sm:$0xff]  ;;  %v50_v22 = vld [vmem:[#allocation2 + $0x30] sm:$0xff] }
  0x15   :  { %784 = vmatpush3.msra.mxu0 %v40_v3  ;;  %v51_v23 = vld [vmem:[#allocation2 + $0x38] sm:$0xff]  ;;  %v52_v24 = vld [vmem:[#allocation2 + $0x40] sm:$0xff]  ;;  %v53_v25 = vld [vmem:[#allocation2 + $0x48] sm:$0xff] }
  0x16   :  { %785 = vmatprep.subr.mxu0 %v39_v5  ;;  %v54_v26 = vld [vmem:[#allocation2 + $0x50] sm:$0xff]  ;;  %v55_v27 = vld [vmem:[#allocation2 + $0x58] sm:$0xff]  ;;  %v56_v28 = vld [vmem:[#allocation2 + $0x60] sm:$0xff] }
  0x17   :  { %786 = vmatpush3.msra.mxu0 %v39_v5  ;;  %v57_v29 = vld [vmem:[#allocation2 + $0x68] sm:$0xff]  ;;  %v58_v30 = vld [vmem:[#allocation2 + $0x70] sm:$0xff]  ;;  %v59_v31 = vld [vmem:[#allocation2 + $0x78] sm:$0xff] }
  0x18   :  { %787 = vmatprep.subr.mxu0 %v38_v6  ;;  %v60_v32 = vld [vmem:[#allocation2 + $0x80] sm:$0xff]  ;;  %v61_v33 = vld [vmem:[#allocation2 + $0x88] sm:$0xff]  ;;  %v62_v34 = vld [vmem:[#allocation2 + $0x90] sm:$0xff] }
  0x19   :  { %788 = vmatpush3.msra.mxu0 %v38_v6  ;;  %v63_v35 = vld [vmem:[#allocation2 + $0x98] sm:$0xff]  ;;  %v64_v36 = vld [vmem:[#allocation2 + $0xa0] sm:$0xff]  ;;  %v65_v37 = vld [vmem:[#allocation2 + $0xa8] sm:$0xff] }
  0x1a   :  { %789 = vmatprep.subr.mxu0 %v37_v7  ;;  %v66_v38 = vld [vmem:[#allocation2 + $0xb0] sm:$0xff]  ;;  %v67_v39 = vld [vmem:[#allocation2 + $0xb8] sm:$0xff]  ;;  %v68_v40 = vld [vmem:[#allocation2 + $0xc0] sm:$0xff] }
  0x1b   :  { %790 = vmatpush3.msra.mxu0 %v37_v7  ;;  %v69_v41 = vld [vmem:[#allocation2 + $0xc8] sm:$0xff]  ;;  %v70_v42 = vld [vmem:[#allocation2 + $0xd0] sm:$0xff]  ;;  %v71_v43 = vld [vmem:[#allocation2 + $0xd8] sm:$0xff] }
  0x1c   :  { %791 = vmatprep.subr.mxu0 %v36_v8  ;;  %v72_v44 = vld [vmem:[#allocation2 + $0xe0] sm:$0xff]  ;;  %v73_v45 = vld [vmem:[#allocation2 + $0xe8] sm:$0xff]  ;;  %v74_v46 = vld [vmem:[#allocation2 + $0xf0] sm:$0xff] }
  0x1d   :  { %792 = vmatpush3.msra.mxu0 %v36_v8  ;;  %v75_v47 = vld [vmem:[#allocation2 + $0xf8] sm:$0xff]  ;;  %v302_v48 = vld [vmem:[%s1176_s2 + $0x8] sm:$0xff]  ;;  %v301_v49 = vld [vmem:[%s1176_s2] sm:$0xff] }
  0x1e   :  { %793 = vmatprep.subr.mxu0 %v35_v9  ;;  %857 = vmatprep.subr.mxu1 %v302_v48 }
  0x1f   :  { %794 = vmatpush3.msra.mxu0 %v35_v9  ;;  %858 = vmatpush3.msra.mxu1 %v302_v48 }
  0x20   :  { %795 = vmatprep.subr.mxu0 %v34_v10  ;;  %859 = vmatprep.subr.mxu1 %v301_v49 }
  0x21   :  { %796 = vmatpush3.msra.mxu0 %v34_v10  ;;  %860 = vmatpush3.msra.mxu1 %v301_v49 }
  0x22   :  { %797 = vmatprep.subr.mxu0 %v33_v11 }
  0x23   :  { %798 = vmatpush3.msra.mxu0 %v33_v11 }
  0x24   :  { %799 = vmatprep.subr.mxu0 %v32_v12 }
  0x25   :  { %800 = vmatpush3.msra.mxu0 %v32_v12 }
  0x26   :  { %801 = vmatprep.subr.mxu0 %v31_v13 }
  0x27   :  { %802 = vmatpush3.msra.mxu0 %v31_v13 }
  0x28   :  { %803 = vmatprep.subr.mxu0 %v30_v14 }
  0x29   :  { %804 = vmatpush3.msra.mxu0 %v30_v14 }
  0x2a   :  { %805 = vmatprep.subr.mxu0 %v29_v15 }
  0x2b   :  { %806 = vmatpush3.msra.mxu0 %v29_v15 }
  0x2c   :  { %807 = vmatprep.subr.mxu0 %v28_v16 }
  0x2d   :  { %808 = vmatpush3.msra.mxu0 %v28_v16 }
  0x2e   :  { %810 = vmatmul.mubr.f32.vlgmr.msra.gmra.mxu0 %v45_v17 }
  0x2f   :  { %812 = vmatprep.mubr.f32.mxu0 %v46_v18 }
  0x32   :  { %813 = vmatmul.mubr.f32.gmra.mxu0 %v47_v19 }
  0x33   :  { %815 = vmatprep.mubr.f32.mxu0 %v48_v20 }
  0x36   :  { %816 = vmatmul.mubr.f32.gmra.mxu0 %v49_v21 }
  0x37   :  { %818 = vmatprep.mubr.f32.mxu0 %v50_v22 }
  0x3a   :  { %819 = vmatmul.mubr.f32.gmra.mxu0 %v51_v23 }
  0x3b   :  { %821 = vmatprep.mubr.f32.mxu0 %v52_v24 }
  0x3e   :  { %822 = vmatmul.mubr.f32.gmra.mxu0 %v53_v25 }
  0x3f   :  { %824 = vmatprep.mubr.f32.mxu0 %v54_v26 }
  0x42   :  { %825 = vmatmul.mubr.f32.gmra.mxu0 %v55_v27 }
  0x43   :  { %827 = vmatprep.mubr.f32.mxu0 %v56_v28 }
  0x46   :  { %828 = vmatmul.mubr.f32.gmra.mxu0 %v57_v29 }
  0x47   :  { %830 = vmatprep.mubr.f32.mxu0 %v58_v30 }
  0x4a   :  { %831 = vmatmul.mubr.f32.gmra.mxu0 %v59_v31 }
  0x4b   :  { %833 = vmatprep.mubr.f32.mxu0 %v60_v32 }
  0x4e   :  { %834 = vmatmul.mubr.f32.gmra.mxu0 %v61_v33 }
  0x4f   :  { %836 = vmatprep.mubr.f32.mxu0 %v62_v34 }
  0x52   :  { %837 = vmatmul.mubr.f32.gmra.mxu0 %v63_v35 }
  0x53   :  { %839 = vmatprep.mubr.f32.mxu0 %v64_v36 }
  0x56   :  { %840 = vmatmul.mubr.f32.gmra.mxu0 %v65_v37 }
  0x57   :  { %842 = vmatprep.mubr.f32.mxu0 %v66_v38 }
  0x5a   :  { %843 = vmatmul.mubr.f32.gmra.mxu0 %v67_v39 }
  0x5b   :  { %845 = vmatprep.mubr.f32.mxu0 %v68_v40 }
  0x5e   :  { %846 = vmatmul.mubr.f32.gmra.mxu0 %v69_v41 }
  0x5f   :  { %848 = vmatprep.mubr.f32.mxu0 %v70_v42 }
  0x62   :  { %849 = vmatmul.mubr.f32.gmra.mxu0 %v71_v43 }
  0x63   :  { %851 = vmatprep.mubr.f32.mxu0 %v72_v44 }
  0x66   :  { %852 = vmatmul.mubr.f32.gmra.mxu0 %v73_v45 }
  0x67   :  { %854 = vmatprep.mubr.f32.mxu0 %v74_v46 }
  0x6a   :  { %855 = vmatmul.mubr.f32.gmra.mxu0 %v75_v47 }
  0xee   :  { %v811_v50 = vpop.f32.mrf.mxu0 }
  0xf0   :  { %v142_v51 = vpop.f32.mrf.mxu0 }
  0xf1   :  { %861 = vmatprep.mubr.msk.f32.mxu1 %vm303_vm0, %v142_v51 }
  0xf2   :  { %v814_v52 = vpop.f32.mrf.mxu0  ;;  %862 = vmatmul.mubr.msk.f32.vlgmr.msra.gmra.mxu1 %vm303_vm0, %v811_v50 }
  0xf4   :  { %v152_v53 = vpop.f32.mrf.mxu0 }
  0xf5   :  { %864 = vmatprep.mubr.msk.f32.mxu1 %vm303_vm0, %v152_v53 }
  0xf6   :  { %v817_v54 = vpop.f32.mrf.mxu0  ;;  %865 = vmatmul.mubr.msk.f32.gmra.mxu1 %vm303_vm0, %v814_v52 }
  0xf8   :  { %v162_v55 = vpop.f32.mrf.mxu0 }
  0xf9   :  { %867 = vmatprep.mubr.msk.f32.mxu1 %vm303_vm0, %v162_v55 }
  0xfa   :  { %v820_v56 = vpop.f32.mrf.mxu0  ;;  %868 = vmatmul.mubr.msk.f32.gmra.mxu1 %vm303_vm0, %v817_v54 }
  0xfc   :  { %v172_v57 = vpop.f32.mrf.mxu0 }
  0xfd   :  { %870 = vmatprep.mubr.msk.f32.mxu1 %vm303_vm0, %v172_v57 }
  0xfe   :  { %v823_v58 = vpop.f32.mrf.mxu0  ;;  %871 = vmatmul.mubr.msk.f32.gmra.mxu1 %vm303_vm0, %v820_v56 }
 0x100   :  { %v182_v59 = vpop.f32.mrf.mxu0 }
 0x101   :  { %873 = vmatprep.mubr.msk.f32.mxu1 %vm303_vm0, %v182_v59 }
 0x102   :  { %v826_v60 = vpop.f32.mrf.mxu0  ;;  %874 = vmatmul.mubr.msk.f32.gmra.mxu1 %vm303_vm0, %v823_v58 }
 0x104   :  { %v192_v61 = vpop.f32.mrf.mxu0 }
 0x105   :  { %876 = vmatprep.mubr.msk.f32.mxu1 %vm303_vm0, %v192_v61 }
 0x106   :  { %v829_v62 = vpop.f32.mrf.mxu0  ;;  %877 = vmatmul.mubr.msk.f32.gmra.mxu1 %vm303_vm0, %v826_v60 }
 0x108   :  { %v202_v63 = vpop.f32.mrf.mxu0 }
 0x109   :  { %879 = vmatprep.mubr.msk.f32.mxu1 %vm303_vm0, %v202_v63 }
 0x10a   :  { %v832_v0 = vpop.f32.mrf.mxu0  ;;  %880 = vmatmul.mubr.msk.f32.gmra.mxu1 %vm303_vm0, %v829_v62 }
 0x10c   :  { %v212_v1 = vpop.f32.mrf.mxu0 }
 0x10d   :  { %882 = vmatprep.mubr.msk.f32.mxu1 %vm303_vm0, %v212_v1 }
 0x10e   :  { %v835_v2 = vpop.f32.mrf.mxu0  ;;  %883 = vmatmul.mubr.msk.f32.gmra.mxu1 %vm303_vm0, %v832_v0 }
 0x110   :  { %v222_v3 = vpop.f32.mrf.mxu0 }
 0x111   :  { %885 = vmatprep.mubr.msk.f32.mxu1 %vm303_vm0, %v222_v3 }
 0x112   :  { %v838_v4 = vpop.f32.mrf.mxu0  ;;  %886 = vmatmul.mubr.msk.f32.gmra.mxu1 %vm303_vm0, %v835_v2 }
 0x114   :  { %v232_v5 = vpop.f32.mrf.mxu0 }
 0x115   :  { %888 = vmatprep.mubr.msk.f32.mxu1 %vm303_vm0, %v232_v5 }
 0x116   :  { %v841_v6 = vpop.f32.mrf.mxu0  ;;  %889 = vmatmul.mubr.msk.f32.gmra.mxu1 %vm303_vm0, %v838_v4 }
 0x118   :  { %v242_v7 = vpop.f32.mrf.mxu0 }
 0x119   :  { %891 = vmatprep.mubr.msk.f32.mxu1 %vm303_vm0, %v242_v7 }
 0x11a   :  { %v844_v8 = vpop.f32.mrf.mxu0  ;;  %892 = vmatmul.mubr.msk.f32.gmra.mxu1 %vm303_vm0, %v841_v6 }
 0x11c   :  { %v252_v9 = vpop.f32.mrf.mxu0 }
 0x11d   :  { %894 = vmatprep.mubr.msk.f32.mxu1 %vm303_vm0, %v252_v9 }
 0x11e   :  { %v847_v10 = vpop.f32.mrf.mxu0  ;;  %895 = vmatmul.mubr.msk.f32.gmra.mxu1 %vm303_vm0, %v844_v8 }
 0x120   :  { %v262_v11 = vpop.f32.mrf.mxu0 }
 0x121   :  { %897 = vmatprep.mubr.msk.f32.mxu1 %vm303_vm0, %v262_v11 }
 0x122   :  { %v850_v12 = vpop.f32.mrf.mxu0  ;;  %898 = vmatmul.mubr.msk.f32.gmra.mxu1 %vm303_vm0, %v847_v10 }
 0x124   :  { %v272_v13 = vpop.f32.mrf.mxu0 }
 0x125   :  { %900 = vmatprep.mubr.msk.f32.mxu1 %vm303_vm0, %v272_v13 }
 0x126   :  { %v853_v14 = vpop.f32.mrf.mxu0  ;;  %901 = vmatmul.mubr.msk.f32.gmra.mxu1 %vm303_vm0, %v850_v12 }
 0x128   :  { %v282_v15 = vpop.f32.mrf.mxu0 }
 0x129   :  { %903 = vmatprep.mubr.msk.f32.mxu1 %vm303_vm0, %v282_v15 }
 0x12a   :  { %v856_v16 = vpop.f32.mrf.mxu0  ;;  %904 = vmatmul.mubr.msk.f32.gmra.mxu1 %vm303_vm0, %v853_v14 }
 0x12c   :  { %v292_v17 = vpop.f32.mrf.mxu0 }
 0x12d   :  { %906 = vmatprep.mubr.msk.f32.mxu1 %vm303_vm0, %v292_v17 }
 0x12e   :  { %907 = vmatmul.mubr.msk.f32.gmra.mxu1 %vm303_vm0, %v856_v16 }
 0x1b2   :  { %v863_v18 = vpop.f32.mrf.mxu1 }
 0x1b3   :  { %627 = vst.msk [vmem:[%s1177_s3 + $0x8] sm:$0xff] %vm625_vm1, %v863_v18 }
 0x1b4   :  { %v466_v19 = vpop.f32.mrf.mxu1 }
 0x1b5   :  { %626 = vst.msk [vmem:[%s1177_s3] sm:$0xff] %vm625_vm1, %v466_v19 }
 0x1b6   :  { %v866_v20 = vpop.f32.mrf.mxu1 }
 0x1b7   :  { %629 = vst.msk [vmem:[%s1177_s3 + $0x18] sm:$0xff] %vm625_vm1, %v866_v20 }
 0x1b8   :  { %v476_v21 = vpop.f32.mrf.mxu1 }
 0x1b9   :  { %628 = vst.msk [vmem:[%s1177_s3 + $0x10] sm:$0xff] %vm625_vm1, %v476_v21 }
 0x1ba   :  { %v869_v22 = vpop.f32.mrf.mxu1 }
 0x1bb   :  { %631 = vst.msk [vmem:[%s1177_s3 + $0x28] sm:$0xff] %vm625_vm1, %v869_v22 }
 0x1bc   :  { %v486_v23 = vpop.f32.mrf.mxu1 }
 0x1bd   :  { %630 = vst.msk [vmem:[%s1177_s3 + $0x20] sm:$0xff] %vm625_vm1, %v486_v23 }
 0x1be   :  { %v872_v24 = vpop.f32.mrf.mxu1 }
 0x1bf   :  { %633 = vst.msk [vmem:[%s1177_s3 + $0x38] sm:$0xff] %vm625_vm1, %v872_v24 }
 0x1c0   :  { %v496_v25 = vpop.f32.mrf.mxu1 }
 0x1c1   :  { %632 = vst.msk [vmem:[%s1177_s3 + $0x30] sm:$0xff] %vm625_vm1, %v496_v25 }
 0x1c2   :  { %v875_v26 = vpop.f32.mrf.mxu1 }
 0x1c3   :  { %635 = vst.msk [vmem:[%s1177_s3 + $0x48] sm:$0xff] %vm625_vm1, %v875_v26 }
 0x1c4   :  { %v506_v27 = vpop.f32.mrf.mxu1 }
 0x1c5   :  { %634 = vst.msk [vmem:[%s1177_s3 + $0x40] sm:$0xff] %vm625_vm1, %v506_v27 }
 0x1c6   :  { %v878_v28 = vpop.f32.mrf.mxu1 }
 0x1c7   :  { %637 = vst.msk [vmem:[%s1177_s3 + $0x58] sm:$0xff] %vm625_vm1, %v878_v28 }
 0x1c8   :  { %v516_v29 = vpop.f32.mrf.mxu1 }
 0x1c9   :  { %636 = vst.msk [vmem:[%s1177_s3 + $0x50] sm:$0xff] %vm625_vm1, %v516_v29 }
 0x1ca   :  { %v881_v30 = vpop.f32.mrf.mxu1 }
 0x1cb   :  { %639 = vst.msk [vmem:[%s1177_s3 + $0x68] sm:$0xff] %vm625_vm1, %v881_v30 }
 0x1cc   :  { %v526_v31 = vpop.f32.mrf.mxu1 }
 0x1cd   :  { %638 = vst.msk [vmem:[%s1177_s3 + $0x60] sm:$0xff] %vm625_vm1, %v526_v31 }
 0x1ce   :  { %v884_v32 = vpop.f32.mrf.mxu1 }
 0x1cf   :  { %641 = vst.msk [vmem:[%s1177_s3 + $0x78] sm:$0xff] %vm625_vm1, %v884_v32 }
 0x1d0   :  { %v536_v33 = vpop.f32.mrf.mxu1 }
 0x1d1   :  { %640 = vst.msk [vmem:[%s1177_s3 + $0x70] sm:$0xff] %vm625_vm1, %v536_v33 }
 0x1d2   :  { %v887_v34 = vpop.f32.mrf.mxu1 }
 0x1d3   :  { %643 = vst.msk [vmem:[%s1177_s3 + $0x88] sm:$0xff] %vm625_vm1, %v887_v34 }
 0x1d4   :  { %v546_v35 = vpop.f32.mrf.mxu1 }
 0x1d5   :  { %642 = vst.msk [vmem:[%s1177_s3 + $0x80] sm:$0xff] %vm625_vm1, %v546_v35 }
 0x1d6   :  { %v890_v36 = vpop.f32.mrf.mxu1 }
 0x1d7   :  { %645 = vst.msk [vmem:[%s1177_s3 + $0x98] sm:$0xff] %vm625_vm1, %v890_v36 }
 0x1d8   :  { %v556_v37 = vpop.f32.mrf.mxu1 }
 0x1d9   :  { %644 = vst.msk [vmem:[%s1177_s3 + $0x90] sm:$0xff] %vm625_vm1, %v556_v37 }
 0x1da   :  { %v893_v38 = vpop.f32.mrf.mxu1 }
 0x1db   :  { %647 = vst.msk [vmem:[%s1177_s3 + $0xa8] sm:$0xff] %vm625_vm1, %v893_v38 }
 0x1dc   :  { %v566_v39 = vpop.f32.mrf.mxu1 }
 0x1dd   :  { %646 = vst.msk [vmem:[%s1177_s3 + $0xa0] sm:$0xff] %vm625_vm1, %v566_v39 }
 0x1de   :  { %v896_v40 = vpop.f32.mrf.mxu1 }
 0x1df   :  { %649 = vst.msk [vmem:[%s1177_s3 + $0xb8] sm:$0xff] %vm625_vm1, %v896_v40 }
 0x1e0   :  { %v576_v41 = vpop.f32.mrf.mxu1 }
 0x1e1   :  { %648 = vst.msk [vmem:[%s1177_s3 + $0xb0] sm:$0xff] %vm625_vm1, %v576_v41 }
 0x1e2   :  { %v899_v42 = vpop.f32.mrf.mxu1 }
 0x1e3   :  { %651 = vst.msk [vmem:[%s1177_s3 + $0xc8] sm:$0xff] %vm625_vm1, %v899_v42 }
 0x1e4   :  { %v586_v43 = vpop.f32.mrf.mxu1 }
 0x1e5   :  { %650 = vst.msk [vmem:[%s1177_s3 + $0xc0] sm:$0xff] %vm625_vm1, %v586_v43 }
 0x1e6   :  { %v902_v44 = vpop.f32.mrf.mxu1 }
 0x1e7   :  { %653 = vst.msk [vmem:[%s1177_s3 + $0xd8] sm:$0xff] %vm625_vm1, %v902_v44 }
 0x1e8   :  { %v596_v45 = vpop.f32.mrf.mxu1 }
 0x1e9   :  { %652 = vst.msk [vmem:[%s1177_s3 + $0xd0] sm:$0xff] %vm625_vm1, %v596_v45 }
 0x1ea   :  { %v905_v46 = vpop.f32.mrf.mxu1 }
 0x1eb   :  { %655 = vst.msk [vmem:[%s1177_s3 + $0xe8] sm:$0xff] %vm625_vm1, %v905_v46 }
 0x1ec   :  { %v606_v47 = vpop.f32.mrf.mxu1 }
 0x1ed   :  { %654 = vst.msk [vmem:[%s1177_s3 + $0xe0] sm:$0xff] %vm625_vm1, %v606_v47 }
 0x1ee   :  { %v908_v48 = vpop.f32.mrf.mxu1 }
 0x1ef   :  { %657 = vst.msk [vmem:[%s1177_s3 + $0xf8] sm:$0xff] %vm625_vm1, %v908_v48 }
 0x1f0   :  { %v616_v49 = vpop.f32.mrf.mxu1 }
 0x1f1   :  { %656 = vst.msk [vmem:[%s1177_s3 + $0xf0] sm:$0xff] %vm625_vm1, %v616_v49 }
 0x1f2   :  { %662 = vsyncpa [#allocation3], 1 }

</bundles_post_ra>
